<compile_context>
chip_gen: v6e
topology: v6e:2x2x1
jax: 0.10.0
libtpu: 0.0.40
codegen_flags: <defaults>
</compile_context>

<pallas_src>
import functools
import math

import numpy as np

import jax
import jax.numpy as jnp
from jax.experimental import pallas as pl
from jax.experimental.pallas import tpu as pltpu

NEG_INF = -1e30
LANE = 128
ALPHA_PAD = 128                        # lane-dense block holding [a_src | a_dst] coefficients
VMEM_LIMIT = 48 * 1024 * 1024          # fits v7x's 64 MiB physical VMEM per TensorCore
DEF_TILE_M = 256                       # destination-node rows per block
DEF_TILE_N = 512                       # source-node columns per block (online-softmax axis)


def _round_up(x, m):
    return ((x + m - 1) // m) * m


# --------------------------------------------------------------------------- #
# Kernel 1: fused (Conv1d o projection o attention coefficients) GEMM.
# Conv1d and h @ [a_src | a_dst] are folded into the weight matrix at build time,
# so this is one MXU GEMM + bias add with two lane-dense (128-multiple) stores.
# --------------------------------------------------------------------------- #
def _project_kernel(x_ref, wc_ref, bc_ref, h_ref, alpha_ref, *, hf_pad):
    x = x_ref[...].astype(jnp.bfloat16)
    z = jnp.dot(x, wc_ref[...], preferred_element_type=jnp.float32) + bc_ref[...]
    h_ref[...] = z[:, :hf_pad].astype(jnp.bfloat16)     # projected features (bf16)
    alpha_ref[...] = z[:, hf_pad:]                      # [a_src | a_dst | 0-pad], f32


def _project(x, wc, bc, *, tm, hf_pad):
    n_pad, f_in_pad = x.shape
    wtot = wc.shape[1]
    return pl.pallas_call(
        functools.partial(_project_kernel, hf_pad=hf_pad),
        grid=(n_pad // tm,),
        out_shape=(jax.ShapeDtypeStruct((n_pad, hf_pad), jnp.bfloat16),
                   jax.ShapeDtypeStruct((n_pad, ALPHA_PAD), jnp.float32)),
        in_specs=[
            pl.BlockSpec((tm, f_in_pad), lambda i: (i, 0)),          # node-feature rows
            pl.BlockSpec((f_in_pad, wtot), lambda i: (0, 0)),        # resident combined W
            pl.BlockSpec((1, wtot), lambda i: (0, 0)),               # combined bias row
        ],
        out_specs=(pl.BlockSpec((tm, hf_pad), lambda i: (i, 0)),
                   pl.BlockSpec((tm, ALPHA_PAD), lambda i: (i, 0))),
        compiler_params=pltpu.CompilerParams(
            dimension_semantics=("parallel",),
            vmem_limit_bytes=VMEM_LIMIT),
    )(x, wc, bc)


# --------------------------------------------------------------------------- #
# Kernel 2: masked attention softmax + aggregation (online softmax over the
# compressed list of non-empty source tiles).
# --------------------------------------------------------------------------- #
def _attn_kernel(nsteps_ref, jmap_ref, adj_ref, adst_ref, asrcT_ref, h_ref, b_ref,
                 o_ref, m_ref, l_ref, acc_ref, *, heads, f_out, hf_pad, apply_elu):
    del jmap_ref                                  # only consumed by the index_maps
    i = pl.program_id(0)
    j = pl.program_id(1)
    nj = pl.num_programs(1)
    real_w = heads * f_out

    @pl.when(j == 0)
    def _init():
        m_ref[...] = jnp.full_like(m_ref, NEG_INF)
        l_ref[...] = jnp.zeros_like(l_ref)
        acc_ref[...] = jnp.zeros_like(acc_ref)

    # Only non-empty adjacency tiles are visited (compressed j axis); trailing repeats
    # (j >= nsteps) are skipped here and their DMAs are elided (block index unchanged).
    @pl.when(j < nsteps_ref[i])
    def _compute():
        adj_f = adj_ref[...].astype(jnp.float32)  # [tm, tn] 0/1 mask
        h_src = h_ref[...]                        # [tn, hf_pad] bf16
        adst = adst_ref[...]                      # [tm, heads] f32 destination coeffs
        asrc_t = asrcT_ref[...]                   # [heads, tn] f32 source coeffs
        tn = adj_f.shape[1]
        ones_col = jnp.ones((tn, 1), jnp.bfloat16)

        m_prev = m_ref[...]
        l_prev = l_ref[...]
        acc_prev = acc_ref[...]

        m_cols, l_cols, acc_cols = [], [], []
        for hh in range(heads):
            a_dst = adst[:, hh:hh + 1]                      # [tm, 1]
            a_src = asrc_t[hh:hh + 1, :]                    # [1, tn]
            e = a_dst + a_src
            e = jnp.maximum(e, 0.2 * e)                     # LeakyReLU(0.2)
            # Cheap per-row UPPER BOUND on max_j e (LeakyReLU is monotone): avoids a
            # [tm, tn] cross-lane reduce; any upper bound keeps exp() from overflowing.
            s_max = jnp.max(a_src, axis=1, keepdims=True)   # [1, 1]
            m_bound = a_dst + s_max
            m_bound = jnp.maximum(m_bound, 0.2 * m_bound)
            m_old = m_prev[:, hh:hh + 1]
            m_new = jnp.maximum(m_old, m_bound)
            corr = jnp.exp(m_old - m_new)                   # [tm, 1]
            # e - m_new <= 0 everywhere, so exp is safe; the 0/1 adjacency multiply
            # masks non-edges (cheaper than compare + select).
            p = jnp.exp(e - m_new) * adj_f                  # [tm, tn]
            # Ones column folds the row-sum (l) into the same MXU pass.
            hm = jnp.concatenate(
                [h_src[:, hh * f_out:(hh + 1) * f_out], ones_col], axis=1)
            res = jnp.dot(p.astype(jnp.bfloat16), hm,
                          preferred_element_type=jnp.float32)   # [tm, f_out + 1]
            acc_cols.append(corr * acc_prev[:, hh * f_out:(hh + 1) * f_out]
                            + res[:, :f_out])
            l_cols.append(corr * l_prev[:, hh:hh + 1] + res[:, f_out:f_out + 1])
            m_cols.append(m_new)

        if real_w < hf_pad:
            acc_cols.append(acc_prev[:, real_w:])            # keep zero pad lanes
        acc_ref[...] = (acc_cols[0] if len(acc_cols) == 1
                        else jnp.concatenate(acc_cols, axis=1))
        m_ref[...] = m_cols[0] if heads == 1 else jnp.concatenate(m_cols, axis=1)
        l_ref[...] = l_cols[0] if heads == 1 else jnp.concatenate(l_cols, axis=1)

    @pl.when(j == nj - 1)
    def _finalize():
        tm_blk = acc_ref.shape[0]
        inv_l = 1.0 / l_ref[...]                  # [tm, heads]; l > 0 (self loops on every row)
        acc = acc_ref[...]
        cols = [acc[:, hh * f_out:(hh + 1) * f_out] * inv_l[:, hh:hh + 1]
                for hh in range(heads)]
        if real_w < hf_pad:
            cols.append(jnp.zeros((tm_blk, hf_pad - real_w), jnp.float32))
        out = cols[0] if len(cols) == 1 else jnp.concatenate(cols, axis=1)
        out = out + b_ref[...]                    # GATConv bias (zero-padded tail)
        if apply_elu:                             # F.elu, alpha = 1
            out = jnp.where(out > 0.0, out, jnp.exp(jnp.minimum(out, 0.0)) - 1.0)
        o_ref[...] = out.astype(o_ref.dtype)      # ONE lane-dense store


def _attention(nsteps, jmap, adj, alpha_dst, alpha_src_t, h, bias, *,
               heads, f_out, hf_pad, tm, tn, grid_j, apply_elu, out_dtype):
    n_pad = adj.shape[0]
    kernel = functools.partial(_attn_kernel, heads=heads, f_out=f_out,
                               hf_pad=hf_pad, apply_elu=apply_elu)
    return pl.pallas_call(
        kernel,
        out_shape=jax.ShapeDtypeStruct((n_pad, hf_pad), out_dtype),
        grid_spec=pltpu.PrefetchScalarGridSpec(
            num_scalar_prefetch=2,
            grid=(n_pad // tm, grid_j),
            in_specs=[
                pl.BlockSpec((tm, tn), lambda i, j, ns, jm: (i, jm[i, j])),     # adj (int8)
                pl.BlockSpec((tm, heads), lambda i, j, ns, jm: (i, 0)),         # alpha_dst
                pl.BlockSpec((heads, tn), lambda i, j, ns, jm: (0, jm[i, j])),  # alpha_src^T
                pl.BlockSpec((tn, hf_pad), lambda i, j, ns, jm: (jm[i, j], 0)), # h src rows
                pl.BlockSpec((1, hf_pad), lambda i, j, ns, jm: (0, 0)),         # layer bias
            ],
            out_specs=pl.BlockSpec((tm, hf_pad), lambda i, j, ns, jm: (i, 0)),
            scratch_shapes=[pltpu.VMEM((tm, heads), jnp.float32),   # running max m
                            pltpu.VMEM((tm, heads), jnp.float32),   # running sum l
                            pltpu.VMEM((tm, hf_pad), jnp.float32)], # packed accumulator
        ),
        compiler_params=pltpu.CompilerParams(
            dimension_semantics=("parallel", "arbitrary"),
            vmem_limit_bytes=VMEM_LIMIT),
    )(nsteps, jmap, adj, alpha_dst, alpha_src_t, h, bias)


# --------------------------------------------------------------------------- #
# Module wrapper
# --------------------------------------------------------------------------- #
class GATPallas:
    """JAX/Pallas re-implementation of the PyTorch GAT module (conv_N_latent=1)."""

    def __init__(self, in_dim, out_dim, num_layers, heads=1, dropout=0.5,
                 add_conv_before_gat=True, tile_m=DEF_TILE_M, tile_n=DEF_TILE_N,
                 key=None):
        assert in_dim % heads == 0
        assert tile_m % LANE == 0 and tile_n % LANE == 0
        self.in_dim = in_dim
        self.out_dim = out_dim
        self.num_layers = num_layers
        self.heads = heads
        self.hidden_dim = in_dim // heads
        self.dropout = dropout
        self.use_conv = add_conv_before_gat
        self.tile_m = tile_m
        self.tile_n = tile_n
        if key is None:
            key = jax.random.PRNGKey(0)

        def glorot(k, shape):
            s = float(np.sqrt(6.0 / (shape[-2] + shape[-1])))
            return jax.random.uniform(k, shape, jnp.float32, -s, s)

        conv_bound = 1.0 / float(np.sqrt(3.0))
        self.layer_cfg = []
        self.params = []
        f_in_real = in_dim
        f_in_pad = _round_up(in_dim, LANE)
        for i in range(num_layers):
            last = i == num_layers - 1
            h = 1 if last else heads
            f_o = out_dim if last else self.hidden_dim
            hf_real = h * f_o
            hf_pad = _round_up(hf_real, LANE)
            key, kw, ks, kd, kc = jax.random.split(key, 5)
            w = glorot(kw, (f_in_real, hf_real))
            a_src = glorot(ks, (h, f_o))
            a_dst = glorot(kd, (h, f_o))
            conv = jax.random.uniform(kc, (4,), jnp.float32, -conv_bound, conv_bound)

            # Fold Conv1d(1, 1, k=3, pad=1) into the projection:
            #   conv(x) = x @ T + cb   (T tridiagonal along the feature axis)
            #   h = conv(x) @ W = x @ (T @ W) + cb * colsum(W)
            if self.use_conv:
                wz = jnp.pad(w, ((1, 1), (0, 0)))
                w_eff = conv[0] * wz[2:, :] + conv[1] * wz[1:-1, :] + conv[2] * wz[:-2, :]
                b_eff = conv[3] * jnp.sum(w, axis=0, keepdims=True)
            else:
                w_eff = w
                b_eff = jnp.zeros((1, hf_real), jnp.float32)

            # Attention-coefficient matrix [a_src | a_dst] (block-diagonal per head),
            # folded into the same GEMM: alpha = x @ (W_eff @ att) + b_eff @ att.
            att = jnp.zeros((hf_real, 2 * h), jnp.float32)
            for hh in range(h):
                att = att.at[hh * f_o:(hh + 1) * f_o, hh].set(a_src[hh])
                att = att.at[hh * f_o:(hh + 1) * f_o, h + hh].set(a_dst[hh])
            wa = w_eff @ att
            ba = b_eff @ att

            # Zero-padded (tail only) combined parameters; real features stay contiguous
            # in front so the next layer's Conv1d fold sees exactly the real columns.
            wtot = hf_pad + ALPHA_PAD
            wc = jnp.zeros((f_in_pad, wtot), jnp.float32)
            wc = wc.at[:f_in_real, :hf_real].set(w_eff)
            wc = wc.at[:f_in_real, hf_pad:hf_pad + 2 * h].set(wa)
            wc = wc.astype(jnp.bfloat16)
            bc = jnp.zeros((1, wtot), jnp.float32)
            bc = bc.at[0, :hf_real].set(b_eff[0])
            bc = bc.at[0, hf_pad:hf_pad + 2 * h].set(ba[0])
            bias = jnp.zeros((1, hf_pad), jnp.float32)       # GATConv output bias (init 0)

            self.params.append((wc, bc, bias))
            self.layer_cfg.append(dict(heads=h, f_out=f_o, f_in_pad=f_in_pad,
                                       hf_pad=hf_pad, hf_real=hf_real))
            f_in_real = hf_real
            f_in_pad = hf_pad

    def __call__(self, x, edge_index, dropout_key):
        n, f = x.shape
        assert f == self.in_dim
        tm, tn = self.tile_m, self.tile_n
        # Pad the node count so (a) both tile sizes divide it and (b) the number of
        # "parallel" dst-row tiles is even (v7x's two TensorCores split the grid evenly).
        base = (2 * tm) * tn // math.gcd(2 * tm, tn)
        n_pad = _round_up(max(n, LANE), base)

        # Dense adjacency in int8 (kernel only needs a 0/1 mask -> half the HBM traffic
        # of bf16): adj[i, j] = 1 iff edge j -> i; self loops on every (incl. padded) row
        # keep every softmax row finite.
        adj = jnp.zeros((n_pad, n_pad), jnp.int8)
        adj = adj.at[edge_index[1], edge_index[0]].set(1)
        diag = jnp.arange(n_pad)
        adj = adj.at[diag, diag].set(1)

        # Per-tile edge counts -> compressed per-dst-tile list of non-empty src tiles,
        # fed through PrefetchScalarGridSpec so empty tiles are neither DMA'd nor computed.
        n_i, n_j = n_pad // tm, n_pad // tn
        counts = np.asarray(
            adj.astype(jnp.int32).reshape(n_i, tm, n_j, tn).sum(axis=(1, 3)))
        present = counts > 0
        nsteps_np = present.sum(axis=1).astype(np.int32)     # >= 1 thanks to self loops
        max_nj = int(nsteps_np.max())
        jmap_np = np.zeros((n_i, max_nj), np.int32)
        for ii in range(n_i):
            idx = np.nonzero(present[ii])[0]
            jmap_np[ii, :idx.size] = idx
            jmap_np[ii, idx.size:] = idx[-1]                 # repeat last -> DMAs elided
        nsteps = jnp.asarray(nsteps_np)
        jmap = jnp.asarray(jmap_np)

        xp = jnp.zeros((n_pad, self.layer_cfg[0]["f_in_pad"]), jnp.float32)
        xp = xp.at[:n, :f].set(x)

        for li, cfg in enumerate(self.layer_cfg):
            wc, bc, bias = self.params[li]
            last = li == self.num_layers - 1
            h_bf, alpha = _project(xp, wc, bc, tm=tm, hf_pad=cfg["hf_pad"])
            heads_i = cfg["heads"]
            alpha_src_t = jnp.transpose(alpha[:, :heads_i])          # [heads, n_pad]
            alpha_dst = alpha[:, heads_i:2 * heads_i]                # [n_pad, heads]
            out = _attention(nsteps, jmap, adj, alpha_dst, alpha_src_t, h_bf, bias,
                             heads=heads_i, f_out=cfg["f_out"], hf_pad=cfg["hf_pad"],
                             tm=tm, tn=tn, grid_j=max_nj, apply_elu=not last,
                             out_dtype=jnp.float32 if last else jnp.bfloat16)
            if (not last) and self.dropout > 0.0:
                # F.dropout(training=True) semantics; tiny O(N*F) XLA op next to the
                # attention kernels, kept outside for portability.
                kd = jax.random.fold_in(dropout_key, li)
                keep = jax.random.bernoulli(kd, 1.0 - self.dropout, out.shape)
                out = jnp.where(keep, out / (1.0 - self.dropout), 0.0).astype(out.dtype)
            xp = out
        return xp[:n, :self.out_dim]


if __name__ == "__main__":
    key = jax.random.PRNGKey(0)
    k_x, k_e1, k_e2, k_p, k_d = jax.random.split(key, 5)

    N, IN_DIM, OUT_DIM, HEADS, NUM_LAYERS = 300, 64, 16, 2, 3
    x = jax.random.normal(k_x, (N, IN_DIM), jnp.float32)

    # Deterministic random directed edges plus a ring so every node participates.
    n_rand = 1500
    src = jax.random.randint(k_e1, (n_rand,), 0, N)
    dst = jax.random.randint(k_e2, (n_rand,), 0, N)
    ring = jnp.arange(N, dtype=jnp.int32)
    edge_index = jnp.stack([jnp.concatenate([src, ring]),
                            jnp.concatenate([dst, (ring + 1) % N])], axis=0)

    # Small tiles so the demo exercises a real multi-tile grid, including an all-empty
    # adjacency tile that gets skipped by the compressed source-tile axis.
    model = GATPallas(IN_DIM, OUT_DIM, NUM_LAYERS, heads=HEADS, dropout=0.5,
                      tile_m=128, tile_n=256, key=k_p)
    out = model(x, edge_index, dropout_key=k_d)
    out = jax.block_until_ready(out)
    assert out.shape == (N, OUT_DIM), out.shape
    assert bool(jnp.all(jnp.isfinite(out)))
    print("KERNEL_OK")
</pallas_src>

<mosaic_0001>
module attributes {stable_mosaic.version = 11 : i64} {
  func.func @_project_kernel(%arg0: i32, %arg1: memref<128x128xf32, #tpu.memory_space<vmem>>, %arg2: memref<128x256xbf16, #tpu.memory_space<vmem>>, %arg3: memref<1x256xf32, #tpu.memory_space<vmem>>, %arg4: memref<128x128xbf16, #tpu.memory_space<vmem>>, %arg5: memref<128x128xf32, #tpu.memory_space<vmem>>) attributes {dimension_semantics = [#tpu.dimension_semantics<parallel>], iteration_bounds = array<i64: 4>, scalar_prefetch = 0 : i64, scratch_operands = 0 : i64, tpu.core_type = #tpu.core_type<tc>, window_params = [{transform_indices = @transform_0, window_bounds = array<i64: 128, 128>}, {pipeline_mode = #tpu.pipeline_mode<synchronous>, transform_indices = @transform_1, window_bounds = array<i64: 128, 256>}, {pipeline_mode = #tpu.pipeline_mode<synchronous>, transform_indices = @transform_2, window_bounds = array<i64: 1, 256>}, {transform_indices = @transform_3, window_bounds = array<i64: 128, 128>}, {transform_indices = @transform_4, window_bounds = array<i64: 128, 128>}]} {
    %c0 = arith.constant 0 : index
    %c0_0 = arith.constant 0 : index
    %0 = vector.load %arg1[%c0, %c0_0] : memref<128x128xf32, #tpu.memory_space<vmem>>, vector<128x128xf32>
    %1 = arith.truncf %0 : vector<128x128xf32> to vector<128x128xbf16>
    %c0_1 = arith.constant 0 : index
    %c0_2 = arith.constant 0 : index
    %2 = vector.load %arg2[%c0_1, %c0_2] : memref<128x256xbf16, #tpu.memory_space<vmem>>, vector<128x256xbf16>
    %cst = arith.constant dense<0.000000e+00> : vector<128x256xf32>
    %3 = tpu.matmul %1, %2, %cst {dimension_numbers = #tpu.dot_dimension_numbers<[1], [0], [0], [1], [0, 0, 1, 1], [], []>} : vector<128x128xbf16>, vector<128x256xbf16>, vector<128x256xf32> -> vector<128x256xf32>
    %c0_3 = arith.constant 0 : index
    %c0_4 = arith.constant 0 : index
    %4 = vector.load %arg3[%c0_3, %c0_4] : memref<1x256xf32, #tpu.memory_space<vmem>>, vector<1x256xf32>
    %5 = vector.broadcast %4 : vector<1x256xf32> to vector<128x256xf32>
    %6 = arith.addf %3, %5 : vector<128x256xf32>
    %7 = vector.extract_strided_slice %6 {offsets = [0, 0], sizes = [128, 128], strides = [1, 1]} : vector<128x256xf32> to vector<128x128xf32>
    %8 = arith.truncf %7 : vector<128x128xf32> to vector<128x128xbf16>
    %c0_5 = arith.constant 0 : index
    %c0_6 = arith.constant 0 : index
    %9 = vector.load %arg4[%c0_5, %c0_6] : memref<128x128xbf16, #tpu.memory_space<vmem>>, vector<128x128xbf16>
    tpu.vector_store %arg4[%c0_5, %c0_6], %8 {strides = array<i32>} : memref<128x128xbf16, #tpu.memory_space<vmem>>, vector<128x128xbf16>,
    %10 = vector.extract_strided_slice %6 {offsets = [0, 128], sizes = [128, 128], strides = [1, 1]} : vector<128x256xf32> to vector<128x128xf32>
    %c0_7 = arith.constant 0 : index
    %c0_8 = arith.constant 0 : index
    %11 = vector.load %arg5[%c0_7, %c0_8] : memref<128x128xf32, #tpu.memory_space<vmem>>, vector<128x128xf32>
    tpu.vector_store %arg5[%c0_7, %c0_8], %10 {strides = array<i32>} : memref<128x128xf32, #tpu.memory_space<vmem>>, vector<128x128xf32>,
    return
  }
  func.func @transform_0(%arg0: i32) -> (i32, i32) {
    %c0_i32 = arith.constant 0 : i32
    %c0_i32_0 = arith.constant 0 : i32
    return %arg0, %c0_i32 : i32, i32
  }
  func.func @transform_1(%arg0: i32) -> (i32, i32) {
    %c0_i32 = arith.constant 0 : i32
    %c0_i32_0 = arith.constant 0 : i32
    %c0_i32_1 = arith.constant 0 : i32
    return %c0_i32, %c0_i32_0 : i32, i32
  }
  func.func @transform_2(%arg0: i32) -> (i32, i32) {
    %c0_i32 = arith.constant 0 : i32
    %c0_i32_0 = arith.constant 0 : i32
    %c0_i32_1 = arith.constant 0 : i32
    return %c0_i32, %c0_i32_0 : i32, i32
  }
  func.func @transform_3(%arg0: i32) -> (i32, i32) {
    %c0_i32 = arith.constant 0 : i32
    %c0_i32_0 = arith.constant 0 : i32
    return %arg0, %c0_i32 : i32, i32
  }
  func.func @transform_4(%arg0: i32) -> (i32, i32) {
    %c0_i32 = arith.constant 0 : i32
    %c0_i32_0 = arith.constant 0 : i32
    return %arg0, %c0_i32 : i32, i32
  }
}

</mosaic_0001>

<bundles_post_ra>
// kernel: tpu_custom_call.1
= control target key start
LH: loop header
LB: loop body
LE: loop exit
PB: predicated region body
PF: predicated region fallthrough
CT: control target
= control target key end

     0   :  { %10 = vsyncpa [#allocation3], 0  ;;  %s1466_s0 = inlined_call_operand.hbm [shape: f32[512,128], index: 0, kind: input, shape index: {}]   ;;  %s1467_s1 = inlined_call_operand.hbm [shape: bf16[128,256], index: 1, kind: input, shape index: {}]   ;;  %s1468_s2 = inlined_call_operand.vmem [shape: f32[1,256], index: 2, kind: input, shape index: {}]   ;;  %s1469_s3 = inlined_call_operand.hbm [shape: bf16[512,128], index: 3, kind: output, shape index: {0}]   ;;  %s1470_s4 = inlined_call_operand.hbm [shape: f32[512,128], index: 4, kind: output, shape index: {1}]  }
   0x1   :  { %12 = vsyncpa [#allocation3 + $0x1], 0 }
   0x2   :  { %13 = vsyncpa [#allocation6], 0 }
   0x3   :  { %14 = vsyncpa [#allocation4], 0 }
   0x4   :  { %16 = vsyncpa [#allocation4 + $0x1], 0 }
   0x5   :  { %17 = vsyncpa [#allocation9], 0 }
   0x6   :  { %19 = vsyncpa [#allocation9 + $0x1], 0  ;;  %s1154_s15 = smov 0   ;;  %s1156_s16 = smov 0  }
   0x7   :  { %s1158_s17 = smov 0   ;;  %s1160_s18 = smov 0  }
   0x8 LB: > { %s1175_s19 = sadd.s32 4294967295, %s1116_s18   ;;  %s737_s20 = sadd.s32 4294967294, %s1116_s18   ;;  %s1116_s18 = sphi %s1160_s18, %s1491_s18   ;;  %s1112_s17 = sphi %s1158_s17, %s1490_s17   ;;  %s1108_s16 = sphi %s1156_s16, %s1489_s16   ;;  %s1104_s15 = sphi %s1154_s15, %s1488_s15  }
   0x9   : > { %p45_p0 = scmp.ne.s32.totalorder %s1108_s16, %s1104_s15  ;;  %p1471_p1 = scmp.eq.s32.totalorder %s1175_s19, 0 }
   0xa   : > { %p117_p3 = scmp.eq.s32.totalorder %s737_s20, 3  ;;  %p738_p5 = scmp.ge.s32.totalorder %s1116_s18, 1 }
   0xb   : > { %p1184_p4 = por %p1471_p1, %p45_p0  ;;  %p150_p7 = scmp.lt.s32.totalorder %s1116_s18, 5 }
   0xc   : > { %p1189_p6 = por %p117_p3, %p45_p0  ;;  %s1118_s24 = smov [#allocation5]  }
   0xd   : > { %s1475_s21 = scalar_select %p1184_p4, 1, 0 }
   0xe   : > { %s1476_s22 = scalar_select %p1189_p6, 1, 0 }
   0xf   : > { %p1194_p8 = pnand %p738_p5, %p150_p7  ;;  %s162_s25 = sshll.u32 %s1118_s24, 4  ;;  %s163_s25 = int_to_ptr.vmem [resolvable:$true] %s162_s25 }
  0x10   : > { %s1207_s27 = sadd.s32 1, %s1116_s18   ;;  %s32_s28 = sadd.s32 1, %s1112_s17 }
  0x11   : > { %s1477_s23 = scalar_select %p1194_p8, 1, 0 }
  0x12   : > { %p881_p9 = pneg %p1194_p8  ;;  %s29_s29 = ssub.s32 %s1116_s18, %s1207_s27 }
  0x13   : > { %s975_s30 = scalar_lea.vmem %s163_s25, 2048  ;;  %p983_p3 = scmp.lt.s32.totalorder %s163_s25, %s163_s25 }
  0x14   : > { %p1202_p10 = pnand %p881_p9, %p1471_p1  ;;  %p976_p12 = scmp.ne.s32.totalorder %s163_s25, %s975_s30 }
  0x15   : > { %p984_p5 = scmp.lt.s32.totalorder %s975_s30, %s975_s30 }
  0x16   : > { %p966_p11 = pneg %p1202_p10 }
  0x17   : > { %p985_p7 = por %p984_p5, %p983_p3 }
  0x18   : > { %p978_p13 = pnand %p976_p12, %p966_p11 }
  0x1a   : > { %p979_p0 = pneg %p978_p13 }
  0x1c   : > { %p986_p2 = pnand %p985_p7, %p979_p0 }
  0x1e   : > { %989 = shalt.err (!%p986_p2)
}
  0x1f   : > { %s1119_s5 = smov 128   ;;  %s1120_s6 = smov 8  }
  0x20   : > { %884 = dma.hbm_to_vmem [thread:$0]  (!%p1202_p10), %s1467_s1, 2048, %s163_s25, [#allocation6], %s1119_s5, %s1119_s5, %s1120_s6  }
  0x21   : > { %p30_p2 = scmp.eq.s32.totalorder %s29_s29, 0  ;;  %p39_p9 = scmp.ne.s32.totalorder %s1112_s17, %s1108_s16 }
  0x22   : > { %p40_p11 = scmp.eq.s32.totalorder %s1116_s18, 0  ;;  %p897_p12 = scmp.lt.s32.totalorder %s1116_s18, 4 }
  0x23   : > { %s1227_s9 = scalar_select %p30_p2, %s1112_s17, %s32_s28  }
  0x24   : > { %p41_p13 = por %p40_p11, %p39_p9  ;;  %p1479_p0 = scmp.eq.s32.totalorder %s1175_s19, 3 }
  0x25   : > { %s179_s11 = sand.u32 1, %s1112_s17   ;;  %s789_s12 = sshll.u32 %s1116_s18, 11 }
  0x26   : > { %p1231_p3 = por %p1479_p0, %p39_p9  ;;  %s741_s13 = sshll.u32 %s179_s11, 7 }
  0x27   : > { %s1240_s24 = scalar_lea.hbm %s1466_s0, %s789_s12  ;;  %s183_s25 = scalar_lea.vmem [#allocation2], %s741_s13 }
  0x28   : > { %s1480_s10 = scalar_select %p1231_p3, 1, 0 }
  0x29   : > { %s190_s26 = sshll.u32 %s183_s25, 4  ;;  %p1242_p10 = pnand %p897_p12, %p41_p13  ;;  %s1246_s26 = int_to_ptr.vmem [resolvable:$true] %s190_s26 }
  0x2a   : > { %s1248_s29 = scalar_lea.sflag [#allocation3], %s179_s11  ;;  %s990_s30 = scalar_lea.hbm %s1240_s24, 2048 }
  0x2b   : > { %p991_p5 = scmp.ne.s32.totalorder %s1240_s24, %s990_s30  ;;  %p992_p7 = pneg %p1242_p10 }
  0x2c   : > { %s995_s12 = scalar_lea.hbm %s1466_s0, 8192  ;;  %p996_p11 = scmp.lt.s32.totalorder %s1240_s24, %s1466_s0 }
  0x2d   : > { %p993_p2 = pnand %p992_p7, %p991_p5  ;;  %p997_p12 = scmp.lt.s32.totalorder %s995_s12, %s990_s30 }
  0x2f   : > { %p994_p9 = pneg %p993_p2  ;;  %p998_p13 = por %p997_p12, %p996_p11 }
  0x31   : > { %p999_p0 = pnand %p998_p13, %p994_p9 }
  0x33   : > { %1002 = shalt.err (!%p999_p0)
}
  0x34   : > { %s1003_s11 = scalar_lea.vmem %s1246_s26, 2048  ;;  %s1121_s20 = smov [#allocation2]  }
  0x35   : > { %p1004_p1 = scmp.ne.s32.totalorder %s1246_s26, %s1003_s11  ;;  %s1008_s25 = sshll.u32 %s1121_s20, 4  ;;  %s1009_s25 = int_to_ptr.vmem [resolvable:$false] %s1008_s25 }
  0x36   : > { %s1010_s7 = scalar_lea.vmem %s1009_s25, 4096  ;;  %p1011_p2 = scmp.lt.s32.totalorder %s1246_s26, %s1009_s25 }
  0x37   : > { %p1006_p6 = pnand %p1004_p1, %p992_p7  ;;  %p1012_p3 = scmp.lt.s32.totalorder %s1010_s7, %s1003_s11 }
  0x39   : > { %p1007_p5 = pneg %p1006_p6  ;;  %p1013_p4 = por %p1012_p3, %p1011_p2 }
  0x3b   : > { %p1014_p8 = pnand %p1013_p4, %p1007_p5 }
  0x3d   : > { %1017 = shalt.err (!%p1014_p8)
}
  0x3e   : > { %888 = dma.hbm_to_vmem [thread:$0]  (!%p1242_p10), %s1240_s24, 2048, %s1246_s26, %s1248_s29, %s1119_s5, %s1119_s5, %s1120_s6  }
  0x3f   : > { %p1482_p1 = scmp.ne.s32.totalorder %s1477_s23, 0 }
  0x40   : > { %s1275_s30 = sand.u32 (!%p1482_p1), 1, %s1108_s16   ;;  %p1483_p4 = scmp.ne.s32.totalorder (!%p1482_p1), %s1475_s21, 0 }
  0x41   : > { %202 = sbr.rel (%p1482_p1) target bundleno = 371 (0x173), region = 32  ;;  %s745_s8 = sshll.u32 (!%p1482_p1), %s1275_s30, 7 }
  0x42   : > { %s205_s12 = scalar_lea.sflag (!%p1482_p1), [#allocation3], %s1275_s30  ;;  %s1281_s28 = scalar_lea.vmem (!%p1482_p1), [#allocation2], %s745_s8 }
  0x46   : > { %1087 = dma.done.wait (%p1483_p4), %s205_s12, 2048  }
  0x47   : > { %1089 = vsyncadd (%p1483_p4), %s205_s12, 4294965248  ;;  %p1484_p6 = scmp.eq.s32.totalorder %s1175_s19, 0 }
  0x49   : > { %1091 = dma.done.wait (%p1484_p6), [#allocation6], 2048   ;;  %p1485_p8 = pmov %p1484_p6 }
  0x4a   : > { %v1122_v0 = vmov 0   ;;  %v940_v1 = vld [vmem:[#allocation5 + $0x74] ss:$8 sps:$4 sm:$0xff]   ;;  %v942_v2 = vld [vmem:[#allocation5 + $0x70] ss:$8 sps:$4 sm:$0xff]   ;;  %v246_v17 = vld [vmem:[%s1281_s28] sm:$0xff]  ;;  %v288_v41 = vlaneseq }
  0x4b   : > { %1093 = vsyncadd (%p1485_p8), [#allocation6], 4294965248  ;;  %410 = vmatprep.mubr.bf16.mxu0 %v1122_v0  ;;  %450 = vmatprep.mubr.bf16.mxu1 %v1122_v0  ;;  %v943_v3 = vld [vmem:[#allocation5 + $0x64] ss:$8 sps:$4 sm:$0xff]   ;;  %v945_v4 = vld [vmem:[#allocation5 + $0x60] ss:$8 sps:$4 sm:$0xff]  }
  0x4c   : > { %378 = vmatprep.subr.bf16.mxu0 %v940_v1  ;;  %855 = vmatprep.subr.bf16.mxu1 %v940_v1  ;;  %v946_v5 = vld [vmem:[#allocation5 + $0x54] ss:$8 sps:$4 sm:$0xff]   ;;  %v948_v6 = vld [vmem:[#allocation5 + $0x50] ss:$8 sps:$4 sm:$0xff]   ;;  %v949_v7 = vld [vmem:[#allocation5 + $0x44] ss:$8 sps:$4 sm:$0xff]  }
  0x4d   : > { %379 = vmatpush1.bf16.msra.mxu0 %v942_v2  ;;  %863 = vmatpush1.bf16.msra.mxu1 %v942_v2  ;;  %v951_v8 = vld [vmem:[#allocation5 + $0x40] ss:$8 sps:$4 sm:$0xff]   ;;  %v952_v9 = vld [vmem:[#allocation5 + $0x34] ss:$8 sps:$4 sm:$0xff]   ;;  %v954_v10 = vld [vmem:[#allocation5 + $0x30] ss:$8 sps:$4 sm:$0xff]  }
  0x4e   : > { %380 = vmatprep.subr.bf16.mxu0 %v943_v3  ;;  %856 = vmatprep.subr.bf16.mxu1 %v943_v3  ;;  %v955_v11 = vld [vmem:[#allocation5 + $0x24] ss:$8 sps:$4 sm:$0xff]   ;;  %v957_v12 = vld [vmem:[#allocation5 + $0x20] ss:$8 sps:$4 sm:$0xff]   ;;  %v958_v13 = vld [vmem:[#allocation5 + $0x14] ss:$8 sps:$4 sm:$0xff]  }
  0x4f   : > { %v960_v14 = vld [vmem:[#allocation5 + $0x10] ss:$8 sps:$4 sm:$0xff]   ;;  %v961_v15 = vld [vmem:[#allocation5 + $0x4] ss:$8 sps:$4 sm:$0xff]   ;;  %v963_v16 = vld [vmem:[#allocation5] ss:$8 sps:$4 sm:$0xff]  }
  0x50   : > { %v247_v18 = vld [vmem:[%s1281_s28 + $0x8] sm:$0xff]  ;;  %v254_v19 = vld [vmem:[%s1281_s28 + $0x40] sm:$0xff]  ;;  %v248_v23 = vld [vmem:[%s1281_s28 + $0x10] sm:$0xff]  ;;  %v289_v42 = vshrl.u32 %v288_v41, 7  ;;  %s747_s5 = sshll.u32 %s1275_s30, 6  ;;  %s1329_s6 = scalar_lea.vmem [#allocation8], %s745_s8 }
  0x51   : > { %381 = vmatpush1.bf16.msra.mxu0 %v945_v4  ;;  %864 = vmatpush1.bf16.msra.mxu1 %v945_v4  ;;  %v255_v20 = vld [vmem:[%s1281_s28 + $0x48] sm:$0xff]  ;;  %v262_v21 = vpack.c.bf16 %v247_v18, %v246_v17  ;;  %v249_v24 = vld [vmem:[%s1281_s28 + $0x18] sm:$0xff]  ;;  %v256_v25 = vld [vmem:[%s1281_s28 + $0x50] sm:$0xff]  ;;  %s1337_s24 = scalar_lea.vmem [#allocation7], %s747_s5  ;;  %s806_s29 = sshll.u32 %s1175_s19, 10 }
  0x52   : > { %382 = vmatprep.subr.bf16.mxu0 %v946_v5  ;;  %857 = vmatprep.subr.bf16.mxu1 %v946_v5  ;;  %v266_v22 = vpack.c.bf16 %v255_v20, %v254_v19  ;;  %v257_v26 = vld [vmem:[%s1281_s28 + $0x58] sm:$0xff]  ;;  %v263_v27 = vpack.c.bf16 %v249_v24, %v248_v23  ;;  %v250_v29 = vld [vmem:[%s1281_s28 + $0x20] sm:$0xff]  ;;  %v251_v30 = vld [vmem:[%s1281_s28 + $0x28] sm:$0xff]  ;;  %v294_v43 = vsub.s32 1, %v289_v42  ;;  %v290_v44 = vsub.s32 0, %v289_v42  ;;  %s606_s26 = sshll.u32 %s1337_s24, 4  ;;  %s1381_s20 = scalar_lea.hbm %s1469_s3, %s806_s29  ;;  %s1373_s26 = int_to_ptr.vmem [resolvable:$true] %s606_s26 }
  0x53   : > { %v267_v28 = vpack.c.bf16 %v257_v26, %v256_v25  ;;  %v258_v31 = vld [vmem:[%s1281_s28 + $0x60] sm:$0xff]  ;;  %v259_v32 = vld [vmem:[%s1281_s28 + $0x68] sm:$0xff]  ;;  %v264_v33 = vpack.c.bf16 %v251_v30, %v250_v29  ;;  %v252_v35 = vld [vmem:[%s1281_s28 + $0x30] sm:$0xff]  ;;  %s807_s13 = sshll.u32 %s1175_s19, 11  ;;  %s622_s19 = sshll.u32 %s1329_s6, 4  ;;  %s1397_s19 = int_to_ptr.vmem [resolvable:$true] %s622_s19 }
  0x54   : > { %v268_v34 = vpack.c.bf16 %v259_v32, %v258_v31  ;;  %v253_v36 = vld [vmem:[%s1281_s28 + $0x38] sm:$0xff]  ;;  %v260_v37 = vld [vmem:[%s1281_s28 + $0x70] sm:$0xff]  ;;  %v286_v45 = vld [vmem:[%s1468_s2] sm:$0x3]  ;;  %s1395_s8 = scalar_lea.hbm %s1470_s4, %s807_s13  ;;  %s588_s12 = scalar_lea.sflag [#allocation4], %s1275_s30 }
  0x55   : > { %383 = vmatpush1.bf16.msra.mxu0 %v948_v6  ;;  %865 = vmatpush1.bf16.msra.mxu1 %v948_v6  ;;  %v261_v38 = vld [vmem:[%s1281_s28 + $0x78] sm:$0xff]  ;;  %v265_v39 = vpack.c.bf16 %v253_v36, %v252_v35  ;;  %v1318_v46 = vrot.slane %v286_v45, %v294_v43  ;;  %v1320_v49 = vrot.slane %v286_v45, %v290_v44  ;;  %s1018_s28 = scalar_lea.vmem %s1373_s26, 1024  ;;  %p1486_p10 = scmp.ne.s32.totalorder %s1480_s10, 0 }
  0x56   : > { %384 = vmatprep.subr.bf16.mxu0 %v949_v7  ;;  %858 = vmatprep.subr.bf16.mxu1 %v949_v7  ;;  %v269_v40 = vpack.c.bf16 %v261_v38, %v260_v37  ;;  %p1019_p3 = scmp.ne.s32.totalorder %s1373_s26, %s1018_s28  ;;  %s1123_s21 = smov [#allocation7]  }
  0x57   : > { %s1022_s23 = sshll.u32 %s1123_s21, 4  ;;  %s1023_s23 = int_to_ptr.vmem [resolvable:$false] %s1022_s23 }
  0x58   : > { %p1020_p7 = pnand %p1019_p3, %p1486_p10  ;;  %s1024_s5 = scalar_lea.vmem %s1023_s23, 2048 }
  0x59   : > { %385 = vmatpush1.bf16.msra.mxu0 %v951_v8  ;;  %866 = vmatpush1.bf16.msra.mxu1 %v951_v8  ;;  %p1025_p11 = scmp.lt.s32.totalorder %s1373_s26, %s1023_s23  ;;  %p1026_p12 = scmp.lt.s32.totalorder %s1024_s5, %s1018_s28 }
  0x5a   : > { %386 = vmatprep.subr.bf16.mxu0 %v952_v9  ;;  %859 = vmatprep.subr.bf16.mxu1 %v952_v9  ;;  %p1021_p9 = pneg %p1020_p7 }
  0x5b   : > { %p1027_p13 = por %p1026_p12, %p1025_p11 }
  0x5d   : > { %387 = vmatpush1.bf16.msra.mxu0 %v954_v10  ;;  %867 = vmatpush1.bf16.msra.mxu1 %v954_v10  ;;  %p1028_p0 = pnand %p1027_p13, %p1021_p9 }
  0x5e   : > { %388 = vmatprep.subr.bf16.mxu0 %v955_v11  ;;  %860 = vmatprep.subr.bf16.mxu1 %v955_v11 }
  0x61   : > { %389 = vmatpush1.bf16.msra.mxu0 %v957_v12  ;;  %868 = vmatpush1.bf16.msra.mxu1 %v957_v12 }
  0x62   : > { %390 = vmatprep.subr.bf16.mxu0 %v958_v13  ;;  %861 = vmatprep.subr.bf16.mxu1 %v958_v13 }
  0x65   : > { %391 = vmatpush1.bf16.msra.mxu0 %v960_v14  ;;  %869 = vmatpush1.bf16.msra.mxu1 %v960_v14 }
  0x66   : > { %392 = vmatprep.subr.bf16.mxu0 %v961_v15  ;;  %862 = vmatprep.subr.bf16.mxu1 %v961_v15 }
  0x69   : > { %393 = vmatpush1.bf16.msra.mxu0 %v963_v16  ;;  %870 = vmatpush1.bf16.msra.mxu1 %v963_v16 }
  0x6c   : > { %411 = vmatmul.mubr.bf16.vlgmr.msra.gmra.mxu0 %v262_v21  ;;  %451 = vmatmul.mubr.bf16.vlgmr.msra.gmra.mxu1 %v266_v22 }
  0x6d   : > { %420 = vmatprep.mubr.bf16.mxu0 %v1122_v0  ;;  %460 = vmatprep.mubr.bf16.mxu1 %v1122_v0 }
  0x74   : > { %421 = vmatmul.mubr.bf16.gmra.mxu0 %v263_v27  ;;  %461 = vmatmul.mubr.bf16.gmra.mxu1 %v267_v28 }
  0x75   : > { %430 = vmatprep.mubr.bf16.mxu0 %v1122_v0  ;;  %470 = vmatprep.mubr.bf16.mxu1 %v1122_v0 }
  0x7c   : > { %431 = vmatmul.mubr.bf16.gmra.mxu0 %v264_v33  ;;  %471 = vmatmul.mubr.bf16.gmra.mxu1 %v268_v34 }
  0x7d   : > { %440 = vmatprep.mubr.bf16.mxu0 %v1122_v0  ;;  %480 = vmatprep.mubr.bf16.mxu1 %v1122_v0 }
  0x84   : > { %441 = vmatmul.mubr.bf16.gmra.mxu0 %v265_v39  ;;  %481 = vmatmul.mubr.bf16.gmra.mxu1 %v269_v40 }
 0x12c   : > { %v412_v47 = vpop.f32.mrf.mxu0  ;;  %v452_v48 = vpop.f32.mrf.mxu1 }
 0x12d   : > { %v413_v56 = vadd.f32 %v412_v47, %v1320_v49  ;;  %v453_v57 = vadd.f32 %v452_v48, %v1320_v49 }
 0x12e   : > { %v414_v50 = vpop.f32.mrf.mxu0  ;;  %v454_v51 = vpop.f32.mrf.mxu1 }
 0x12f   : > { %v415_v52 = vadd.f32 %v414_v50, %v1318_v46  ;;  %v455_v53 = vadd.f32 %v454_v51, %v1318_v46 }
 0x130   : > { %v416_v54 = vpop.f32.mrf.mxu0  ;;  %v456_v55 = vpop.f32.mrf.mxu1 }
 0x131   : > { %571 = vst [vmem:[%s1329_s6] sm:$0xff] %v415_v52  ;;  %579 = vst [vmem:[%s1329_s6 + $0x40] sm:$0xff] %v455_v53  ;;  %v417_v58 = vadd.f32 %v416_v54, %v1320_v49  ;;  %v457_v59 = vadd.f32 %v456_v55, %v1320_v49 }
 0x132   : > { %v418_v60 = vpop.f32.mrf.mxu0  ;;  %v458_v61 = vpop.f32.mrf.mxu1 }
 0x133   : > { %v811_v62 = vpack.c.bf16 %v417_v58, %v413_v56  ;;  %v831_v63 = vpack.c.bf16 %v457_v59, %v453_v57  ;;  %v419_v0 = vadd.f32 %v418_v60, %v1318_v46  ;;  %v459_v1 = vadd.f32 %v458_v61, %v1318_v46 }
 0x134   : > { %v422_v2 = vpop.f32.mrf.mxu0  ;;  %v462_v3 = vpop.f32.mrf.mxu1 }
 0x135   : > { %812 = vst [vmem:[%s1337_s24] sm:$0xff] %v811_v62   ;;  %851 = vst [vmem:[%s1337_s24 + $0x20] sm:$0xff] %v831_v63   ;;  %v423_v10 = vadd.f32 %v422_v2, %v1320_v49  ;;  %v463_v11 = vadd.f32 %v462_v3, %v1320_v49 }
 0x136   : > { %572 = vst [vmem:[%s1329_s6 + $0x8] sm:$0xff] %v419_v0  ;;  %580 = vst [vmem:[%s1329_s6 + $0x48] sm:$0xff] %v459_v1  ;;  %v424_v4 = vpop.f32.mrf.mxu0  ;;  %v464_v5 = vpop.f32.mrf.mxu1 }
 0x137   : > { %v425_v6 = vadd.f32 %v424_v4, %v1318_v46  ;;  %v465_v7 = vadd.f32 %v464_v5, %v1318_v46 }
 0x138   : > { %v426_v8 = vpop.f32.mrf.mxu0  ;;  %v466_v9 = vpop.f32.mrf.mxu1 }
 0x139   : > { %573 = vst [vmem:[%s1329_s6 + $0x10] sm:$0xff] %v425_v6  ;;  %581 = vst [vmem:[%s1329_s6 + $0x50] sm:$0xff] %v465_v7  ;;  %v427_v12 = vadd.f32 %v426_v8, %v1320_v49  ;;  %v467_v13 = vadd.f32 %v466_v9, %v1320_v49 }
 0x13a   : > { %v428_v14 = vpop.f32.mrf.mxu0  ;;  %v468_v15 = vpop.f32.mrf.mxu1 }
 0x13b   : > { %v816_v16 = vpack.c.bf16 %v427_v12, %v423_v10  ;;  %v836_v17 = vpack.c.bf16 %v467_v13, %v463_v11  ;;  %v429_v18 = vadd.f32 %v428_v14, %v1318_v46  ;;  %v469_v19 = vadd.f32 %v468_v15, %v1318_v46 }
 0x13c   : > { %v432_v20 = vpop.f32.mrf.mxu0  ;;  %v472_v21 = vpop.f32.mrf.mxu1 }
 0x13d   : > { %848 = vst [vmem:[%s1337_s24 + $0x8] sm:$0xff] %v816_v16   ;;  %852 = vst [vmem:[%s1337_s24 + $0x28] sm:$0xff] %v836_v17   ;;  %v433_v28 = vadd.f32 %v432_v20, %v1320_v49  ;;  %v473_v29 = vadd.f32 %v472_v21, %v1320_v49 }
 0x13e   : > { %574 = vst [vmem:[%s1329_s6 + $0x18] sm:$0xff] %v429_v18  ;;  %582 = vst [vmem:[%s1329_s6 + $0x58] sm:$0xff] %v469_v19  ;;  %v434_v22 = vpop.f32.mrf.mxu0  ;;  %v474_v23 = vpop.f32.mrf.mxu1 }
 0x13f   : > { %v435_v24 = vadd.f32 %v434_v22, %v1318_v46  ;;  %v475_v25 = vadd.f32 %v474_v23, %v1318_v46 }
 0x140   : > { %v436_v26 = vpop.f32.mrf.mxu0  ;;  %v476_v27 = vpop.f32.mrf.mxu1 }
 0x141   : > { %575 = vst [vmem:[%s1329_s6 + $0x20] sm:$0xff] %v435_v24  ;;  %583 = vst [vmem:[%s1329_s6 + $0x60] sm:$0xff] %v475_v25  ;;  %v437_v30 = vadd.f32 %v436_v26, %v1320_v49  ;;  %v477_v31 = vadd.f32 %v476_v27, %v1320_v49 }
 0x142   : > { %v438_v32 = vpop.f32.mrf.mxu0  ;;  %v478_v33 = vpop.f32.mrf.mxu1 }
 0x143   : > { %v821_v34 = vpack.c.bf16 %v437_v30, %v433_v28  ;;  %v841_v35 = vpack.c.bf16 %v477_v31, %v473_v29  ;;  %v439_v36 = vadd.f32 %v438_v32, %v1318_v46  ;;  %v479_v37 = vadd.f32 %v478_v33, %v1318_v46 }
 0x144   : > { %v442_v38 = vpop.f32.mrf.mxu0  ;;  %v482_v39 = vpop.f32.mrf.mxu1 }
 0x145   : > { %849 = vst [vmem:[%s1337_s24 + $0x10] sm:$0xff] %v821_v34   ;;  %853 = vst [vmem:[%s1337_s24 + $0x30] sm:$0xff] %v841_v35   ;;  %v443_v47 = vadd.f32 %v442_v38, %v1320_v49  ;;  %v483_v48 = vadd.f32 %v482_v39, %v1320_v49 }
 0x146   : > { %576 = vst [vmem:[%s1329_s6 + $0x28] sm:$0xff] %v439_v36  ;;  %584 = vst [vmem:[%s1329_s6 + $0x68] sm:$0xff] %v479_v37  ;;  %v444_v40 = vpop.f32.mrf.mxu0  ;;  %v484_v41 = vpop.f32.mrf.mxu1 }
 0x147   : > { %v445_v42 = vadd.f32 %v444_v40, %v1318_v46  ;;  %v485_v43 = vadd.f32 %v484_v41, %v1318_v46 }
 0x148   : > { %v446_v44 = vpop.f32.mrf.mxu0  ;;  %v486_v45 = vpop.f32.mrf.mxu1 }
 0x149   : > { %577 = vst [vmem:[%s1329_s6 + $0x30] sm:$0xff] %v445_v42  ;;  %585 = vst [vmem:[%s1329_s6 + $0x70] sm:$0xff] %v485_v43  ;;  %v447_v50 = vadd.f32 %v446_v44, %v1320_v49  ;;  %v487_v51 = vadd.f32 %v486_v45, %v1320_v49 }
 0x14a   : > { %v448_v52 = vpop.f32.mrf.mxu0  ;;  %v488_v53 = vpop.f32.mrf.mxu1 }
 0x14b   : > { %v826_v54 = vpack.c.bf16 %v447_v50, %v443_v47  ;;  %v846_v55 = vpack.c.bf16 %v487_v51, %v483_v48  ;;  %v449_v56 = vadd.f32 %v448_v52, %v1318_v46  ;;  %v489_v57 = vadd.f32 %v488_v53, %v1318_v46 }
 0x14d   : > { %850 = vst [vmem:[%s1337_s24 + $0x18] sm:$0xff] %v826_v54   ;;  %854 = vst [vmem:[%s1337_s24 + $0x38] sm:$0xff] %v846_v55  }
 0x14e   : > { %578 = vst [vmem:[%s1329_s6 + $0x38] sm:$0xff] %v449_v56  ;;  %586 = vst [vmem:[%s1329_s6 + $0x78] sm:$0xff] %v489_v57 }
 0x14f   : > { %1031 = shalt.err (!%p1028_p0)
}
 0x150   : > { %s1032_s6 = scalar_lea.hbm %s1381_s20, 1024  ;;  %s1036_s13 = scalar_lea.hbm %s1469_s3, 4096 }
 0x151   : > { %p1033_p5 = scmp.ne.s32.totalorder %s1381_s20, %s1032_s6  ;;  %p1037_p4 = scmp.lt.s32.totalorder %s1381_s20, %s1469_s3 }
 0x152   : > { %p1038_p6 = scmp.lt.s32.totalorder %s1036_s13, %s1032_s6 }
 0x153   : > { %p1034_p2 = pnand %p1033_p5, %p1486_p10 }
 0x154   : > { %p1039_p8 = por %p1038_p6, %p1037_p4 }
 0x155   : > { %p1035_p1 = pneg %p1034_p2 }
 0x157   : > { %p1040_p3 = pnand %p1039_p8, %p1035_p1 }
 0x159   : > { %1043 = shalt.err (!%p1040_p3)
}
 0x15a   : > { %s1124_s25 = smov 64   ;;  %s1125_s7 = smov 4  }
 0x15b   : > { %877 = dma.vmem_to_hbm [thread:$0]  (%p1486_p10), %s1373_s26, 1024, %s1381_s20, %s588_s12, %s1124_s25, %s1124_s25, %s1125_s7  }
 0x15c   : > { %s593_s28 = scalar_lea.sflag [#allocation9], %s1275_s30  ;;  %s1044_s21 = scalar_lea.vmem %s1397_s19, 2048 }
 0x15d   : > { %p1045_p7 = scmp.ne.s32.totalorder %s1397_s19, %s1044_s21  ;;  %s1126_s23 = smov [#allocation8]  }
 0x15e   : > { %s1048_s5 = sshll.u32 %s1126_s23, 4  ;;  %s1049_s5 = int_to_ptr.vmem [resolvable:$false] %s1048_s5 }
 0x15f   : > { %p1046_p9 = pnand %p1045_p7, %p1486_p10  ;;  %s1050_s6 = scalar_lea.vmem %s1049_s5, 4096 }
 0x160   : > { %p1051_p12 = scmp.lt.s32.totalorder %s1397_s19, %s1049_s5  ;;  %p1052_p13 = scmp.lt.s32.totalorder %s1050_s6, %s1044_s21 }
 0x161   : > { %p1047_p11 = pneg %p1046_p9 }
 0x162   : > { %p1053_p0 = por %p1052_p13, %p1051_p12 }
 0x164   : > { %p1054_p5 = pnand %p1053_p0, %p1047_p11 }
 0x166   : > { %1057 = shalt.err (!%p1054_p5)
}
 0x167   : > { %s1058_s26 = scalar_lea.hbm %s1395_s8, 2048  ;;  %s1062_s24 = scalar_lea.hbm %s1470_s4, 8192 }
 0x168   : > { %p1059_p2 = scmp.ne.s32.totalorder %s1395_s8, %s1058_s26  ;;  %p1063_p6 = scmp.lt.s32.totalorder %s1395_s8, %s1470_s4 }
 0x169   : > { %p1064_p8 = scmp.lt.s32.totalorder %s1062_s24, %s1058_s26 }
 0x16a   : > { %p1060_p1 = pnand %p1059_p2, %p1486_p10 }
 0x16b   : > { %p1065_p3 = por %p1064_p8, %p1063_p6 }
 0x16c   : > { %p1061_p4 = pneg %p1060_p1 }
 0x16e   : > { %p1066_p7 = pnand %p1065_p3, %p1061_p4 }
 0x170   : > { %1069 = shalt.err (!%p1066_p7)
}
 0x171   : > { %s1127_s14 = smov 128   ;;  %s1128_s11 = smov 8  }
 0x172   : > { %878 = dma.vmem_to_hbm [thread:$0]  (%p1486_p10), %s1397_s19, 2048, %s1395_s8, %s593_s28, %s1127_s14, %s1127_s14, %s1128_s11  }
 0x173 PF: > { %p899_p9 = scmp.ge.s32.totalorder %s1116_s18, 2  ;;  %s637_s25 = sand.u32 1, %s1104_s15  }
 0x174   : > { %p1487_p11 = scmp.ne.s32.totalorder %s1476_s22, 0  ;;  %s638_s7 = scalar_lea.sflag [#allocation4], %s637_s25 }
 0x176   : > { %p890_p12 = pnand %p899_p9, %p1487_p11 }
 0x178   : > { %p891_p13 = pneg %p890_p12 }
 0x17a   : > { %1095 = dma.done.wait (%p891_p13), %s638_s7, 1024  }
 0x17b   : > { %1097 = vsyncadd (%p891_p13), %s638_s7, 4294966272  ;;  %s647_s21 = scalar_lea.sflag [#allocation9], %s637_s25 }
 0x17c   : > { %1099 = dma.done.wait (%p891_p13), %s647_s21, 2048  }
 0x17d   : > { %1101 = vsyncadd (%p891_p13), %s647_s21, 4294965248  ;;  %p22_p10 = scmp.ge.s32.totalorder %s1207_s27, 6   ;;  %s1488_s15 = smov %s1108_s16 }
 0x17e   : > { %s1489_s16 = smov %s1112_s17  ;;  %s1490_s17 = smov %s1227_s9 }
 0x17f   : > { %s1491_s18 = smov %s1207_s27  ;;  %24 = sbr.rel (!%p22_p10) target bundleno = 8 (0x8), region = 98 }
 0x184   :  { %652 = vsyncpa [#allocation3], 1 }
 0x185   :  { %654 = vsyncpa [#allocation3 + $0x1], 1 }
 0x186   :  { %655 = vsyncpa [#allocation6], 1 }
 0x187   :  { %656 = vsyncpa [#allocation4], 1 }
 0x188   :  { %658 = vsyncpa [#allocation4 + $0x1], 1 }
 0x189   :  { %659 = vsyncpa [#allocation9], 1 }
 0x18a   :  { %661 = vsyncpa [#allocation9 + $0x1], 1 }

</bundles_post_ra>
